<compile_context>
chip_gen: v7x
topology: tpu7x:2x2x1
jax: 0.10.0
libtpu: 0.0.40
codegen_flags: <defaults>
</compile_context>

<pallas_src>
import functools

import jax
import jax.numpy as jnp
from jax.experimental import pallas as pl
from jax.experimental.pallas import tpu as pltpu

LANE = 128     # vreg lane width: last dim of every block
SUBLANE = 8    # f32 vreg sublane count


def _pow_gamma(base, gamma):
    """base**gamma with cheap specializations (gamma==2 -> square, int -> muls)."""
    g = float(gamma)
    if g == 2.0:
        return base * base
    if g == round(g) and g >= 0.0:
        gi = int(round(g))
        if gi == 0:
            return jnp.ones_like(base)
        w = base
        for _ in range(gi - 1):
            w = w * base
        return w
    return base ** g


def _focal_loss_kernel(x_ref, t_ref, out_ref, *, gamma, tm, tc, rem_last,
                       needs_mask, binary_targets):
    i = pl.program_id(0)
    n_full = tm // tc
    tail = tm - n_full * tc

    def chunk_partial(xs, ts, base_idx, masked):
        x = xs.astype(jnp.float32)          # upcast in-register (inputs may be bf16)
        t = ts.astype(jnp.float32)
        e = jnp.exp(-jnp.abs(x))
        # Numerically stable BCE-with-logits (== F.binary_cross_entropy_with_logits):
        #   bce = max(x, 0) - x*t + log(1 + exp(-|x|))
        bce = jnp.maximum(x, 0.0) - x * t + jnp.log1p(e)

        if binary_targets:
            # For {0,1} targets: 1 - pt = t*(1 - sigmoid(x)) + (1-t)*sigmoid(x).
            # Reuses e, drops the second exp; exact f32 divide (no approx recip).
            inv = 1.0 / (1.0 + e)
            a = inv                      # sigmoid(|x|)
            b = e * inv                  # sigmoid(-|x|)
            pos = x >= 0.0
            p = jnp.where(pos, a, b)     # sigmoid(x)
            q = jnp.where(pos, b, a)     # 1 - sigmoid(x)
            one_minus_pt = t * q + (1.0 - t) * p
        else:
            # Exact module semantics (valid for soft targets): pt = exp(-bce).
            one_minus_pt = jnp.maximum(1.0 - jnp.exp(-bce), 0.0)

        loss = _pow_gamma(one_minus_pt, gamma) * bce   # alpha folded into wrapper

        if masked:
            # Static rem_last (<= tm*LANE) -> no int32 overflow for huge inputs.
            row = jax.lax.broadcasted_iota(jnp.int32, loss.shape, 0)
            col = jax.lax.broadcasted_iota(jnp.int32, loss.shape, 1)
            idx = base_idx + row * LANE + col
            loss = jnp.where(idx < rem_last, loss, 0.0)

        # Fold (nrows, 128) -> (8, 128) with elementwise vreg adds (VPU only).
        nrows = loss.shape[0]
        return loss.reshape(nrows // SUBLANE, SUBLANE, LANE).sum(axis=0)

    def block_partial(masked):
        def chunk(start_row, nrows):
            return chunk_partial(
                x_ref[pl.ds(start_row, nrows), :],
                t_ref[pl.ds(start_row, nrows), :],
                start_row * LANE, masked)

        acc = jnp.zeros((SUBLANE, LANE), jnp.float32)
        if n_full == 1:
            acc = acc + chunk(0, tc)
        elif n_full > 1:
            def body(c, a):
                start = pl.multiple_of(c * tc, tc)
                return a + chunk(start, tc)
            acc = jax.lax.fori_loop(0, n_full, body, acc, unroll=True)
        if tail:
            acc = acc + chunk(n_full * tc, tail)
        return acc

    if needs_mask:
        last = pl.num_programs(0) - 1

        @pl.when(i != last)
        def _():
            out_ref[...] = block_partial(False)

        @pl.when(i == last)
        def _():
            out_ref[...] = block_partial(True)
    else:
        out_ref[...] = block_partial(False)


def _default_tm():
    # Generation-tuned row tile: 8192 rows (4 MiB f32 per input block)
    # amortizes the ~0.35 us/step pipeline overhead on v6e/v7x; v5e's slower
    # HBM is already saturated at 4096.  With 512-row compute chunks the
    # per-block VMEM stays ~20 MiB, well under v7x's 64 MiB.
    try:
        kind = jax.devices()[0].device_kind.lower()
    except Exception:
        return 8192
    if "v5" in kind and ("lite" in kind or "v5e" in kind):
        return 4096
    return 8192


def focal_loss(inputs, targets, *, alpha=1.0, gamma=2.0, reduction="mean",
               binary_targets=False, tm=None):
    """FocalLoss(alpha, gamma, logits=True) forward pass on TPU.

    binary_targets=True enables the sigmoid fast path (exact for {0,1} masks,
    one fewer transcendental per element); the default reproduces the module's
    pt = exp(-BCE) exactly, including for soft targets.
    """
    # TODO(synk): reduction='none' (per-element output) not implemented; module default is 'mean'.
    if reduction not in ("mean", "sum"):
        raise NotImplementedError("focal_loss: only reduction='mean'/'sum' supported")
    n = int(inputs.size)
    if n == 0:
        raise ValueError("focal_loss: empty input")

    x = inputs.reshape(-1)
    t = targets.reshape(-1)

    # Pad only to a lane multiple (128); most real shapes hit the zero-copy
    # path.  Tiny inputs are padded up to one (8, 128) vreg tile.  Note: any
    # pad is a whole-tensor HBM read+write before the kernel.
    n_up = pl.cdiv(n, LANE) * LANE
    n_up = max(n_up, SUBLANE * LANE)
    if n_up != n:
        x = jnp.pad(x, (0, n_up - n))
        t = jnp.pad(t, (0, n_up - n))

    x = x.reshape(-1, LANE)
    t = t.reshape(-1, LANE)
    rows = x.shape[0]

    if tm is None:
        tm = _default_tm()
    tm = int(min(tm, rows))
    tm = max(SUBLANE, (tm // SUBLANE) * SUBLANE)
    # Keep >= 2 grid steps whenever possible so both v7x TensorCores get work.
    if rows > SUBLANE and pl.cdiv(rows, tm) < 2:
        half = -(-rows // 2)
        tm = max(SUBLANE, ((half + SUBLANE - 1) // SUBLANE) * SUBLANE)
    grid = pl.cdiv(rows, tm)

    tc = min(512, tm)                            # in-kernel compute chunk (rows)
    rem_last = n - (grid - 1) * tm * LANE        # Python int: no int32 overflow
    needs_mask = rem_last < tm * LANE

    kernel = functools.partial(
        _focal_loss_kernel,
        gamma=float(gamma), tm=tm, tc=tc, rem_last=int(rem_last),
        needs_mask=bool(needs_mask), binary_targets=bool(binary_targets))

    # Default double-buffering; pipeline_mode=pl.Buffered(3) is a v7x tuning
    # knob to sweep once the VMEM budget is confirmed on hardware.
    partials = pl.pallas_call(
        kernel,
        out_shape=jax.ShapeDtypeStruct((grid * SUBLANE, LANE), jnp.float32),
        grid_spec=pltpu.PrefetchScalarGridSpec(
            num_scalar_prefetch=0,
            grid=(grid,),
            in_specs=[
                pl.BlockSpec((tm, LANE), lambda i: (i, 0)),
                pl.BlockSpec((tm, LANE), lambda i: (i, 0)),
            ],
            out_specs=pl.BlockSpec((SUBLANE, LANE), lambda i: (i, 0)),
        ),
        compiler_params=pltpu.CompilerParams(
            dimension_semantics=("parallel",),
            vmem_limit_bytes=48 << 20),
    )(x, t)

    # Tiny cross-lane reduction + alpha + mean in JAX (partials is a few KiB).
    total = jnp.float32(alpha) * jnp.sum(partials)
    if reduction == "sum":
        return total
    return total / jnp.float32(n)


def _focal_loss_ref(inputs, targets, alpha=1.0, gamma=2.0):
    x = inputs.astype(jnp.float32)
    t = targets.astype(jnp.float32)
    bce = jnp.maximum(x, 0.0) - x * t + jnp.log1p(jnp.exp(-jnp.abs(x)))
    pt = jnp.exp(-bce)
    return jnp.mean(alpha * (1.0 - pt) ** gamma * bce)


if __name__ == "__main__":
    key = jax.random.PRNGKey(0)
    k1, k2, k3, k4 = jax.random.split(key, 4)

    # NCHW logits + binary mask, matching typical segmentation-mask usage.
    logits = jax.random.normal(k1, (2, 4, 16, 16), dtype=jnp.float32)
    masks = (jax.random.uniform(k2, (2, 4, 16, 16)) > 0.5).astype(jnp.float32)
    ref = _focal_loss_ref(logits, masks)

    out_exact = focal_loss(logits, masks)                        # exact exp(-bce) path
    out_fast = focal_loss(logits, masks, binary_targets=True)    # sigmoid fast path
    jax.block_until_ready((out_exact, out_fast))
    assert jnp.allclose(out_exact, ref, rtol=1e-5, atol=1e-6), (out_exact, ref)
    assert jnp.allclose(out_fast, ref, rtol=1e-5, atol=1e-6), (out_fast, ref)

    # Ragged element count (3*439 = 1317, not a multiple of 128) exercises the
    # minimal pad + static-remainder tail mask.
    rl = jax.random.normal(k3, (3, 439), dtype=jnp.float32)
    rm = (jax.random.uniform(k4, (3, 439)) > 0.5).astype(jnp.float32)
    out_r = focal_loss(rl, rm, binary_targets=True)
    ref_r = _focal_loss_ref(rl, rm)
    assert jnp.allclose(out_r, ref_r, rtol=1e-5, atol=1e-6), (out_r, ref_r)

    # bf16 logits stream at half the HBM bytes; the kernel upcasts in-register.
    out_bf16 = focal_loss(logits.astype(jnp.bfloat16), masks, binary_targets=True)
    ref_bf16 = _focal_loss_ref(logits.astype(jnp.bfloat16), masks)
    jax.block_until_ready(out_bf16)
    assert jnp.allclose(out_bf16, ref_bf16, rtol=1e-5, atol=1e-6), (out_bf16, ref_bf16)

    print("KERNEL_OK")
</pallas_src>

<mosaic_0001>
module attributes {stable_mosaic.version = 11 : i64} {
  func.func @_focal_loss_kernel(%arg0: i32, %arg1: memref<8x128xf32, #tpu.memory_space<vmem>>, %arg2: memref<8x128xf32, #tpu.memory_space<vmem>>, %arg3: memref<8x128xf32, #tpu.memory_space<vmem>>) attributes {dimension_semantics = [#tpu.dimension_semantics<parallel>], iteration_bounds = array<i64: 2>, scalar_prefetch = 0 : i64, scratch_operands = 0 : i64, tpu.core_type = #tpu.core_type<tc>, window_params = [{transform_indices = @transform_0, window_bounds = array<i64: 8, 128>}, {transform_indices = @transform_1, window_bounds = array<i64: 8, 128>}, {transform_indices = @transform_2, window_bounds = array<i64: 8, 128>}]} {
    %cst = arith.constant 0.000000e+00 : f32
    %0 = vector.broadcast %cst : f32 to vector<8x128xf32>
    %c0 = arith.constant 0 : index
    %c0_0 = arith.constant 0 : index
    %1 = vector.load %arg1[%c0, %c0_0] : memref<8x128xf32, #tpu.memory_space<vmem>>, vector<8x128xf32>
    %c0_1 = arith.constant 0 : index
    %c0_2 = arith.constant 0 : index
    %2 = vector.load %arg2[%c0_1, %c0_2] : memref<8x128xf32, #tpu.memory_space<vmem>>, vector<8x128xf32>
    %3 = math.absf %1 : vector<8x128xf32>
    %cst_3 = arith.constant 0.000000e+00 : f32
    %4 = vector.broadcast %cst_3 : f32 to vector<8x128xf32>
    %5 = arith.subf %4, %3 : vector<8x128xf32>
    %6 = math.exp %5 : vector<8x128xf32>
    %cst_4 = arith.constant 0.000000e+00 : f32
    %7 = vector.broadcast %cst_4 : f32 to vector<8x128xf32>
    %8 = arith.maximumf %1, %7 : vector<8x128xf32>
    %9 = arith.mulf %1, %2 : vector<8x128xf32>
    %10 = arith.subf %8, %9 : vector<8x128xf32>
    %11 = math.log1p %6 : vector<8x128xf32>
    %12 = arith.addf %10, %11 : vector<8x128xf32>
    %cst_5 = arith.constant 0.000000e+00 : f32
    %13 = vector.broadcast %cst_5 : f32 to vector<8x128xf32>
    %14 = arith.subf %13, %12 : vector<8x128xf32>
    %15 = math.exp %14 : vector<8x128xf32>
    %cst_6 = arith.constant 1.000000e+00 : f32
    %16 = vector.broadcast %cst_6 : f32 to vector<8x128xf32>
    %17 = arith.subf %16, %15 : vector<8x128xf32>
    %cst_7 = arith.constant 0.000000e+00 : f32
    %18 = vector.broadcast %cst_7 : f32 to vector<8x128xf32>
    %19 = arith.maximumf %17, %18 : vector<8x128xf32>
    %20 = arith.mulf %19, %19 : vector<8x128xf32>
    %21 = arith.mulf %20, %12 : vector<8x128xf32>
    %22 = vector.shape_cast %21 : vector<8x128xf32> to vector<1x8x128xf32>
    %cst_8 = arith.constant dense<0.000000e+00> : vector<8x128xf32>
    %23 = vector.multi_reduction <add>, %22, %cst_8 [0] : vector<1x8x128xf32> to vector<8x128xf32>
    %24 = arith.addf %0, %23 : vector<8x128xf32>
    %c0_9 = arith.constant 0 : index
    %c0_10 = arith.constant 0 : index
    %25 = vector.load %arg3[%c0_9, %c0_10] : memref<8x128xf32, #tpu.memory_space<vmem>>, vector<8x128xf32>
    tpu.vector_store %arg3[%c0_9, %c0_10], %24 {strides = array<i32>} : memref<8x128xf32, #tpu.memory_space<vmem>>, vector<8x128xf32>,
    return
  }
  func.func @transform_0(%arg0: i32) -> (i32, i32) {
    %c0_i32 = arith.constant 0 : i32
    %c0_i32_0 = arith.constant 0 : i32
    return %arg0, %c0_i32 : i32, i32
  }
  func.func @transform_1(%arg0: i32) -> (i32, i32) {
    %c0_i32 = arith.constant 0 : i32
    %c0_i32_0 = arith.constant 0 : i32
    return %arg0, %c0_i32 : i32, i32
  }
  func.func @transform_2(%arg0: i32) -> (i32, i32) {
    %c0_i32 = arith.constant 0 : i32
    %c0_i32_0 = arith.constant 0 : i32
    return %arg0, %c0_i32 : i32, i32
  }
}

</mosaic_0001>

<bundles_post_ra>
// kernel: tpu_custom_call.1
= control target key start
LH: loop header
LB: loop body
LE: loop exit
PB: predicated region body
PF: predicated region fallthrough
CT: control target
= control target key end

     0   :  { %7 = vsyncpa [#allocation3], 0  ;;  %s768_s0 = inlined_call_operand.hbm [shape: f32[16,128], index: 0, kind: input, shape index: {}]   ;;  %s769_s1 = inlined_call_operand.hbm [shape: f32[16,128], index: 1, kind: input, shape index: {}]   ;;  %s770_s2 = inlined_call_operand.hbm [shape: f32[16,128], index: 2, kind: output, shape index: {}]  }
   0x1   :  { %9 = vsyncpa [#allocation3 + $0x1], 0 }
   0x2   :  { %10 = vsyncpa [#allocation6], 0 }
   0x3   :  { %12 = vsyncpa [#allocation6 + $0x1], 0 }
   0x4   :  { %13 = vsyncpa [#allocation4], 0 }
   0x5   :  { %15 = vsyncpa [#allocation4 + $0x1], 0  ;;  %s554_s9 = smov 0   ;;  %s556_s10 = smov 0  }
   0x6   :  { %s558_s11 = smov 0   ;;  %s560_s12 = smov 0  }
   0x7 LB: > { %s575_s13 = sadd.s32 4294967295, %s534_s12   ;;  %s332_s14 = sadd.s32 4294967294, %s534_s12   ;;  %s534_s12 = sphi %s560_s12, %s789_s12   ;;  %s530_s11 = sphi %s558_s11, %s788_s11   ;;  %s526_s10 = sphi %s556_s10, %s787_s10   ;;  %s522_s9 = sphi %s554_s9, %s786_s9  }
   0x8   : > { %s579_s15 = sadd.s32 1, %s534_s12   ;;  %s28_s16 = sadd.s32 1, %s530_s11 }
   0x9   : > { %s25_s17 = ssub.s32 %s534_s12, %s579_s15  ;;  %p35_p0 = scmp.ne.s32.totalorder %s530_s11, %s526_s10 }
   0xa   : > { %p26_p1 = scmp.eq.s32.totalorder %s25_s17, 0  ;;  %p36_p2 = scmp.eq.s32.totalorder %s534_s12, 0 }
   0xb   : > { %p41_p3 = scmp.ne.s32.totalorder %s526_s10, %s522_s9  ;;  %p42_p4 = scmp.eq.s32.totalorder %s575_s13, 0 }
   0xc   : > { %s591_s18 = scalar_select %p26_p1, %s530_s11, %s28_s16  }
   0xd   : > { %p593_p5 = por %p36_p2, %p35_p0  ;;  %p597_p6 = por %p42_p4, %p41_p3 }
   0xe   : > { %p91_p7 = scmp.eq.s32.totalorder %s575_s13, 1  ;;  %p97_p8 = scmp.eq.s32.totalorder %s332_s14, 1 }
   0xf   : > { %s774_s20 = scalar_select %p597_p6, 1, 0 }
  0x10   : > { %p364_p10 = scmp.lt.s32.totalorder %s534_s12, 2  ;;  %p604_p11 = por %p91_p7, %p35_p0 }
  0x11   : > { %p608_p12 = por %p97_p8, %p41_p3  ;;  %s613_s23 = sand.u32 1, %s530_s11  }
  0x12   : > { %s775_s21 = scalar_select %p604_p11, 1, 0 }
  0x13   : > { %s776_s22 = scalar_select %p608_p12, 1, 0 }
  0x14   : > { %s336_s24 = sshll.u32 %s534_s12, 7  ;;  %s335_s25 = sshll.u32 %s613_s23, 3 }
  0x15   : > { %s622_s28 = scalar_lea.hbm %s768_s0, %s336_s24  ;;  %s121_s29 = scalar_lea.vmem [#allocation2], %s335_s25 }
  0x16   : > { %s128_s30 = sshll.u32 %s121_s29, 4  ;;  %p628_p13 = pnand %p364_p10, %p593_p5  ;;  %s632_s30 = int_to_ptr.vmem [resolvable:$true] %s128_s30 }
  0x17   : > { %s118_s4 = scalar_lea.sflag [#allocation3], %s613_s23  ;;  %s404_s5 = scalar_lea.hbm %s622_s28, 128 }
  0x18   : > { %p405_p2 = scmp.ne.s32.totalorder %s622_s28, %s404_s5  ;;  %p406_p3 = pneg %p628_p13 }
  0x19   : > { %s409_s8 = scalar_lea.hbm %s768_s0, 256  ;;  %p410_p5 = scmp.lt.u32.totalorder %s622_s28, %s768_s0 }
  0x1a   : > { %p407_p4 = pnand %p406_p3, %p405_p2  ;;  %p411_p8 = scmp.lt.u32.totalorder %s409_s8, %s404_s5 }
  0x1b   : > { %p413_p9 = scmp.lt.u32.totalorder %s404_s5, %s622_s28 }
  0x1c   : > { %p408_p7 = pneg %p407_p4  ;;  %p412_p10 = por %p411_p8, %p410_p5 }
  0x1e   : > { %p414_p0 = por %p413_p9, %p412_p10 }
  0x20   : > { %p415_p1 = pnand %p414_p0, %p408_p7 }
  0x22   : > { %418 = shalt.err (!%p415_p1)
}
  0x23   : > { %s419_s17 = scalar_lea.vmem %s632_s30, 128  ;;  %s536_s19 = smov [#allocation2]  }
  0x24   : > { %p420_p2 = scmp.ne.s32.totalorder %s632_s30, %s419_s17  ;;  %s424_s26 = sshll.u32 %s536_s19, 4  ;;  %s425_s26 = int_to_ptr.vmem [resolvable:$false] %s424_s26 }
  0x25   : > { %s426_s27 = scalar_lea.vmem %s425_s26, 256  ;;  %p427_p11 = scmp.lt.s32.totalorder %s632_s30, %s425_s26 }
  0x26   : > { %p422_p4 = pnand %p420_p2, %p406_p3  ;;  %p428_p5 = scmp.lt.s32.totalorder %s426_s27, %s419_s17 }
  0x28   : > { %p423_p12 = pneg %p422_p4  ;;  %p429_p8 = por %p428_p5, %p427_p11 }
  0x2a   : > { %p430_p9 = pnand %p429_p8, %p423_p12 }
  0x2c   : > { %433 = shalt.err (!%p430_p9)
}
  0x2d   : > { %356 = dma.hbm_to_vmem [thread:$0]  (!%p628_p13), %s622_s28, 128, %s632_s30, %s118_s4  }
  0x2e   : > { %p778_p0 = scmp.lt.s32.totalorder %s534_s12, 3  ;;  %p779_p1 = scmp.ge.s32.totalorder %s534_s12, 1 }
  0x2f   : > { %s675_s7 = scalar_lea.hbm %s769_s1, %s336_s24  ;;  %s139_s8 = scalar_lea.vmem [#allocation5], %s335_s25 }
  0x30   : > { %p666_p7 = pnand %p779_p1, %p778_p0  ;;  %s146_s14 = sshll.u32 %s139_s8, 4  ;;  %s147_s14 = int_to_ptr.vmem [resolvable:$true] %s146_s14 }
  0x31   : > { %s136_s28 = scalar_lea.sflag [#allocation6], %s613_s23  ;;  %s434_s30 = scalar_lea.hbm %s675_s7, 128 }
  0x32   : > { %s780_s29 = scalar_select %p666_p7, 1, 0 }
  0x33   : > { %p435_p11 = scmp.ne.s32.totalorder %s675_s7, %s434_s30  ;;  %s439_s24 = scalar_lea.hbm %s769_s1, 256 }
  0x34   : > { %p440_p2 = scmp.lt.u32.totalorder %s675_s7, %s769_s1  ;;  %p441_p4 = scmp.lt.u32.totalorder %s439_s24, %s434_s30 }
  0x35   : > { %p437_p12 = pnand %p435_p11, %p406_p3  ;;  %p443_p8 = scmp.lt.u32.totalorder %s434_s30, %s675_s7 }
  0x36   : > { %p442_p5 = por %p441_p4, %p440_p2 }
  0x37   : > { %p438_p10 = pneg %p437_p12 }
  0x38   : > { %p444_p9 = por %p443_p8, %p442_p5 }
  0x3a   : > { %p445_p0 = pnand %p444_p9, %p438_p10 }
  0x3c   : > { %448 = shalt.err (!%p445_p0)
}
  0x3d   : > { %s449_s23 = scalar_lea.vmem %s147_s14, 128  ;;  %s537_s25 = smov [#allocation5]  }
  0x3e   : > { %p450_p1 = scmp.ne.s32.totalorder %s147_s14, %s449_s23  ;;  %s454_s26 = sshll.u32 %s537_s25, 4  ;;  %s455_s26 = int_to_ptr.vmem [resolvable:$false] %s454_s26 }
  0x3f   : > { %s456_s27 = scalar_lea.vmem %s455_s26, 256  ;;  %p457_p6 = scmp.lt.s32.totalorder %s147_s14, %s455_s26 }
  0x40   : > { %p452_p11 = pnand %p450_p1, %p406_p3  ;;  %p458_p7 = scmp.lt.s32.totalorder %s456_s27, %s449_s23 }
  0x42   : > { %p453_p12 = pneg %p452_p11  ;;  %p459_p2 = por %p458_p7, %p457_p6 }
  0x44   : > { %p460_p4 = pnand %p459_p2, %p453_p12 }
  0x46   : > { %463 = shalt.err (!%p460_p4)
}
  0x47   : > { %359 = dma.hbm_to_vmem [thread:$0]  (!%p628_p13), %s675_s7, 128, %s147_s14, %s136_s28  }
  0x48   : > { %p781_p10 = scmp.ne.s32.totalorder %s780_s29, 0 }
  0x49   : > { %s702_s5 = sand.u32 (!%p781_p10), 1, %s526_s10   ;;  %p782_p6 = scmp.ne.s32.totalorder (!%p781_p10), %s774_s20, 0 }
  0x4a   : > { %155 = sbr.rel (%p781_p10) target bundleno = 157 (0x9d), region = 28  ;;  %s705_s6 = sshll.u32 (!%p781_p10), %s702_s5, 3 }
  0x4b   : > { %s158_s8 = scalar_lea.sflag (!%p781_p10), [#allocation3], %s702_s5  ;;  %s161_s30 = scalar_lea.vmem (!%p781_p10), [#allocation2], %s705_s6 }
  0x51   : > { %509 = dma.done.wait (%p782_p6), %s158_s8, 128  }
  0x52   : > { %511 = vsyncadd (%p782_p6), %s158_s8, 4294967168  ;;  %s167_s3 = scalar_lea.sflag [#allocation6], %s702_s5  ;;  %s170_s29 = scalar_lea.vmem [#allocation5], %s705_s6 }
  0x53   : > { %513 = dma.done.wait (%p782_p6), %s167_s3, 128  }
  0x54   : > { %515 = vsyncadd (%p782_p6), %s167_s3, 4294967168  ;;  %v196_v0 = vld [vmem:[%s161_s30] sm:$0xff]  ;;  %v197_v7 = vld [vmem:[%s170_s29] sm:$0xff]  ;;  %s195_s20 = scalar_lea.vmem [#allocation7], %s705_s6  ;;  %s344_s14 = sshll.u32 %s575_s13, 7 }
  0x55   : > { %v198_v1 = vand.u32 2147483647, %v196_v0  ;;  %v202_v9 = vmax.f32 %v196_v0, 0.0  ;;  %v203_v10 = vmul.f32 %v197_v7, %v196_v0  ;;  %s239_s7 = sshll.u32 %s195_s20, 4  ;;  %s726_s16 = scalar_lea.hbm %s770_s2, %s344_s14  ;;  %s721_s7 = int_to_ptr.vmem [resolvable:$true] %s239_s7 }
  0x56   : > { %s226_s24 = scalar_lea.sflag [#allocation4], %s702_s5  ;;  %s464_s17 = scalar_lea.vmem %s721_s7, 128 }
  0x57   : > { %v199_v2 = vsub.f32 0.0, %v198_v1  ;;  %v204_v14 = vsub.f32 %v202_v9, %v203_v10  ;;  %p465_p13 = scmp.ne.s32.totalorder %s721_s7, %s464_s17  ;;  %p783_p3 = scmp.ne.s32.totalorder %s775_s21, 0 }
  0x58   : > { %s538_s13 = smov [#allocation7]  }
  0x59   : > { %v200_v3 = vmul.f32 1.442695, %v199_v2  ;;  %p466_p7 = pnand %p465_p13, %p783_p3  ;;  %s468_s19 = sshll.u32 %s538_s13, 4  ;;  %s469_s19 = int_to_ptr.vmem [resolvable:$false] %s468_s19 }
  0x5a   : > { %s470_s23 = scalar_lea.vmem %s469_s19, 256  ;;  %p471_p8 = scmp.lt.s32.totalorder %s721_s7, %s469_s19 }
  0x5b   : > { %398 = vpow2.f32 %v200_v3  ;;  %p467_p5 = pneg %p466_p7  ;;  %p472_p9 = scmp.lt.s32.totalorder %s470_s23, %s464_s17 }
  0x5d   : > { %p473_p0 = por %p472_p9, %p471_p8 }
  0x5f   : > { %p474_p1 = pnand %p473_p0, %p467_p5 }
  0x65   : > { %v399_v4 = vpop.eup %398 }
  0x66   : > { %v205_v5 = vadd.f32 1.0, %v399_v4  ;;  %v208_v6 = vmul.f32 -0.5, %v399_v4  ;;  %v211_v11 = vand.u32 2147483647, %v399_v4 }
  0x68   : > { %400 = vlog2.f32 %v205_v5  ;;  %v209_v8 = vadd.f32 1.0, %v208_v6  ;;  %vm212_vm0 = vcmp.lt.f32.partialorder %v211_v11, 0.0004427343 }
  0x6a   : > { %v210_v12 = vmul.f32 %v399_v4, %v209_v8 }
  0x72   : > { %v401_v13 = vpop.eup %400 }
  0x73   : > { %v207_v15 = vmul.f32 0.6931472, %v401_v13 }
  0x75   : > { %v213_v16 = vsel %vm212_vm0, %v210_v12, %v207_v15 }
  0x76   : > { %v214_v17 = vadd.f32 %v213_v16, %v204_v14 }
  0x78   : > { %v215_v18 = vsub.f32 0.0, %v214_v17 }
  0x7a   : > { %v216_v19 = vmul.f32 1.442695, %v215_v18 }
  0x7c   : > { %402 = vpow2.f32 %v216_v19 }
  0x86   : > { %v403_v20 = vpop.eup %402 }
  0x87   : > { %v218_v21 = vsub.f32 1.0, %v403_v20 }
  0x89   : > { %v219_v22 = vmax.f32 %v218_v21, 0.0 }
  0x8b   : > { %v220_v23 = vmul.f32 %v219_v22, %v219_v22 }
  0x8d   : > { %v221_v24 = vmul.f32 %v220_v23, %v214_v17 }
  0x8f   : > { %224 = vst [vmem:[%s195_s20] sm:$0xff] %v221_v24 }
  0x90   : > { %477 = shalt.err (!%p474_p1)
}
  0x91   : > { %s478_s25 = scalar_lea.hbm %s726_s16, 128  ;;  %s482_s5 = scalar_lea.hbm %s770_s2, 256 }
  0x92   : > { %p479_p11 = scmp.ne.s32.totalorder %s726_s16, %s478_s25  ;;  %p483_p4 = scmp.lt.u32.totalorder %s726_s16, %s770_s2 }
  0x93   : > { %p484_p10 = scmp.lt.u32.totalorder %s482_s5, %s478_s25  ;;  %p486_p13 = scmp.lt.u32.totalorder %s478_s25, %s726_s16 }
  0x94   : > { %p480_p12 = pnand %p479_p11, %p783_p3 }
  0x95   : > { %p485_p6 = por %p484_p10, %p483_p4 }
  0x96   : > { %p481_p2 = pneg %p480_p12 }
  0x97   : > { %p487_p7 = por %p486_p13, %p485_p6 }
  0x99   : > { %p488_p5 = pnand %p487_p7, %p481_p2 }
  0x9b   : > { %491 = shalt.err (!%p488_p5)
}
  0x9c   : > { %351 = dma.vmem_to_hbm [thread:$0]  (%p783_p3), %s721_s7, 128, %s726_s16, %s226_s24  }
  0x9d PF: > { %s251_s30 = sand.u32 1, %s522_s9   ;;  %p784_p8 = scmp.ne.s32.totalorder %s776_s22, 0 }
  0x9e   : > { %p785_p9 = scmp.ge.s32.totalorder %s534_s12, 2  ;;  %s252_s3 = scalar_lea.sflag [#allocation4], %s251_s30 }
  0xa0   : > { %p361_p0 = pnand %p785_p9, %p784_p8 }
  0xa2   : > { %517 = dma.done.wait (!%p361_p0), %s252_s3, 128  }
  0xa3   : > { %519 = vsyncadd (!%p361_p0), %s252_s3, 4294967168  ;;  %p18_p1 = scmp.ge.s32.totalorder %s579_s15, 4   ;;  %s786_s9 = smov %s526_s10 }
  0xa4   : > { %s787_s10 = smov %s530_s11  ;;  %s788_s11 = smov %s591_s18 }
  0xa5   : > { %s789_s12 = smov %s579_s15  ;;  %20 = sbr.rel (!%p18_p1) target bundleno = 7 (0x7), region = 86 }
  0xac   :  { %257 = vsyncpa [#allocation3], 1 }
  0xad   :  { %259 = vsyncpa [#allocation3 + $0x1], 1 }
  0xae   :  { %260 = vsyncpa [#allocation6], 1 }
  0xaf   :  { %262 = vsyncpa [#allocation6 + $0x1], 1 }
  0xb0   :  { %263 = vsyncpa [#allocation4], 1 }
  0xb1   :  { %265 = vsyncpa [#allocation4 + $0x1], 1 }

</bundles_post_ra>
